<compile_context>
chip_gen: v7x
topology: tpu7x:2x2x1
jax: 0.10.0
libtpu: 0.0.40
codegen_flags: <defaults>
</compile_context>

<pallas_src>
import functools

import numpy as np
import jax
import jax.numpy as jnp
from jax import lax
from jax.experimental import pallas as pl
from jax.experimental.pallas import tpu as pltpu


def _mha_kernel(q_ref, k_ref, v_ref, wq_ref, wk_ref, wv_ref, o_ref, *,
                heads: int, depth: int, mask_right: bool, mxu_dtype):
    # q_ref: (Sq, D)   k_ref / v_ref: (Sk, D)
    # wq_ref / wk_ref / wv_ref: (D, D)  (scale already folded into wq)
    # o_ref: (Sq, D) -- final (B, Sq, D) layout, lane-dense store.
    qh = jnp.dot(q_ref[...].astype(mxu_dtype), wq_ref[...].astype(mxu_dtype),
                 preferred_element_type=jnp.float32)
    kh = jnp.dot(k_ref[...].astype(mxu_dtype), wk_ref[...].astype(mxu_dtype),
                 preferred_element_type=jnp.float32)
    vh = jnp.dot(v_ref[...].astype(mxu_dtype), wv_ref[...].astype(mxu_dtype),
                 preferred_element_type=jnp.float32)

    sq = q_ref.shape[0]
    sk = k_ref.shape[0]
    if mask_right:
        row = lax.broadcasted_iota(jnp.int32, (sq, sk), 0)
        col = lax.broadcasted_iota(jnp.int32, (sq, sk), 1)
        causal = col <= row   # faithful to the PyTorch source (diagonal masked)

    head_outs = []
    for h in range(heads):          # static loop, heads is a trace-time const
        sl = slice(h * depth, (h + 1) * depth)
        q_h = qh[:, sl].astype(mxu_dtype)
        k_h = kh[:, sl].astype(mxu_dtype)
        # scores[i, j] = <q_h[i], k_h[j]>  (depth contracted on the MXU)
        s = lax.dot_general(q_h, k_h, (((1,), (1,)), ((), ())),
                            preferred_element_type=jnp.float32)
        if mask_right:
            s = jnp.where(causal, s - 1e9, s)
        # mask_right == False: reference subtracts a constant 1e9 everywhere,
        # a no-op under softmax -> skipped.

        m = jnp.max(s, axis=-1, keepdims=True)
        e = jnp.exp(s - m)
        inv = pl.reciprocal(jnp.sum(e, axis=-1, keepdims=True), approx=True)
        p = (e * inv).astype(mxu_dtype)
        head_outs.append(jnp.dot(p, vh[:, sl].astype(mxu_dtype),
                                 preferred_element_type=jnp.float32))

    # Single lane-dense (Sq, D) store in the final output layout.
    o_ref[...] = jnp.concatenate(head_outs, axis=-1).astype(o_ref.dtype)


def multi_head_attention(q, k, v, w_q, w_k, w_v, *, heads: int,
                         mask_right: bool = False, mxu_dtype=None):
    """Pallas forward pass of MultiHeadAttention.

    q, k, v:        (B, S, latent_dim) activations.
    w_q, w_k, w_v:  (latent_dim, latent_dim) nn.Linear weights in PyTorch
                    (out_features, in_features) layout, bias-free.
    mxu_dtype:      dtype fed to the MXU (default: input dtype; use
                    jnp.bfloat16 on v6e/v7x for the fast MXU path).
    Returns (B, Sq, latent_dim).
    """
    B, Sq, D = q.shape
    _, Sk, _ = k.shape
    assert v.shape == (B, Sk, D)
    assert D % heads == 0, "latent_dim must be divisible by heads"
    depth = D // heads
    scale = 1.0 / float(np.sqrt(depth))
    if mxu_dtype is None:
        mxu_dtype = q.dtype

    # nn.Linear computes x @ W.T; fold the 1/sqrt(depth) scale into the query
    # weight so the kernel never multiplies the (Sq, Sk) score tile by it.
    wqt = (w_q.T * scale).astype(q.dtype)
    wkt = jnp.asarray(w_k.T, dtype=q.dtype)
    wvt = jnp.asarray(w_v.T, dtype=q.dtype)

    kernel = functools.partial(_mha_kernel, heads=heads, depth=depth,
                               mask_right=mask_right, mxu_dtype=mxu_dtype)

    out = pl.pallas_call(
        kernel,
        out_shape=jax.ShapeDtypeStruct((B, Sq, D), q.dtype),
        grid_spec=pltpu.PrefetchScalarGridSpec(
            num_scalar_prefetch=0,
            grid=(B,),                       # one step per batch element
            in_specs=[
                pl.BlockSpec((None, Sq, D), lambda b: (b, 0, 0)),
                pl.BlockSpec((None, Sk, D), lambda b: (b, 0, 0)),
                pl.BlockSpec((None, Sk, D), lambda b: (b, 0, 0)),
                # Full (D, D) weights, constant index_map -> VMEM-resident,
                # DMA'd once for the whole grid.
                pl.BlockSpec((D, D), lambda b: (0, 0)),
                pl.BlockSpec((D, D), lambda b: (0, 0)),
                pl.BlockSpec((D, D), lambda b: (0, 0)),
            ],
            # Output written directly in (B, Sq, D) layout, lane-dense last dim.
            out_specs=pl.BlockSpec((None, Sq, D), lambda b: (b, 0, 0)),
        ),
        compiler_params=pltpu.CompilerParams(
            dimension_semantics=("parallel",),   # megacore shards batch only
        ),
    )(q, k, v, wqt, wkt, wvt)

    # TODO(synk): optional v_mask / q_mask inputs (None in this test) are not
    # plumbed into the kernel (v_mask = additive score mask, q_mask = output
    # multiply).
    # TODO(synk): for long sequences add Sq tiling and a KV grid axis with an
    # online (flash) softmax instead of materializing the full (Sq, Sk) tile
    # (matters first on v7x's 64 MiB VMEM).
    return out


def _mha_reference(q, k, v, w_q, w_k, w_v, *, heads: int, mask_right: bool = False):
    """Plain-JAX reference matching the PyTorch module's math."""
    B, Sq, D = q.shape
    depth = D // heads
    hp = lax.Precision.HIGHEST

    def proj(x, w):
        y = jnp.matmul(x, w.T, precision=hp)
        return jnp.transpose(jnp.reshape(y, (B, -1, heads, depth)), (0, 2, 1, 3))

    wq, wk, wv = proj(q, w_q), proj(k, w_k), proj(v, w_v)
    scores = jnp.einsum("bhqd,bhkd->bhqk", wq, wk, precision=hp) / np.sqrt(depth)
    if mask_right:
        sq, sk = scores.shape[-2:]
        row = np.arange(sq)[:, None]
        col = np.arange(sk)[None, :]
        scores = scores - jnp.asarray((col <= row) * 1e9, scores.dtype)
    attn = jax.nn.softmax(scores, axis=-1)
    out = jnp.einsum("bhqk,bhkd->bhqd", attn, wv, precision=hp)
    return jnp.reshape(jnp.transpose(out, (0, 2, 1, 3)), (B, Sq, D))


if __name__ == "__main__":
    B, S, D, H = 2, 8, 32, 4   # batch, seq, latent_dim, heads -> depth = 8

    key = jax.random.PRNGKey(0)
    kq, kk, kv, k1, k2, k3 = jax.random.split(key, 6)
    q = jax.random.normal(kq, (B, S, D), dtype=jnp.float32)
    k = jax.random.normal(kk, (B, S, D), dtype=jnp.float32)
    v = jax.random.normal(kv, (B, S, D), dtype=jnp.float32)
    # nn.Linear(latent_dim, latent_dim, bias=False) weights, (out, in) layout.
    w_q = jax.random.normal(k1, (D, D), dtype=jnp.float32) / np.sqrt(D)
    w_k = jax.random.normal(k2, (D, D), dtype=jnp.float32) / np.sqrt(D)
    w_v = jax.random.normal(k3, (D, D), dtype=jnp.float32) / np.sqrt(D)

    for mask_right in (False, True):
        out = multi_head_attention(q, k, v, w_q, w_k, w_v, heads=H,
                                   mask_right=mask_right)
        out = jax.block_until_ready(out)
        ref = _mha_reference(q, k, v, w_q, w_k, w_v, heads=H,
                             mask_right=mask_right)
        np.testing.assert_allclose(np.asarray(out), np.asarray(ref),
                                   rtol=2e-3, atol=2e-3)

    print("KERNEL_OK")
</pallas_src>

<mosaic_0001>
module attributes {stable_mosaic.version = 11 : i64} {
  func.func @_mha_kernel(%arg0: i32, %arg1: memref<1x8x32xf32, #tpu.memory_space<vmem>>, %arg2: memref<1x8x32xf32, #tpu.memory_space<vmem>>, %arg3: memref<1x8x32xf32, #tpu.memory_space<vmem>>, %arg4: memref<32x32xf32, #tpu.memory_space<vmem>>, %arg5: memref<32x32xf32, #tpu.memory_space<vmem>>, %arg6: memref<32x32xf32, #tpu.memory_space<vmem>>, %arg7: memref<1x8x32xf32, #tpu.memory_space<vmem>>) attributes {dimension_semantics = [#tpu.dimension_semantics<parallel>], iteration_bounds = array<i64: 2>, scalar_prefetch = 0 : i64, scratch_operands = 0 : i64, tpu.core_type = #tpu.core_type<tc>, window_params = [{transform_indices = @transform_0, window_bounds = array<i64: 1, 8, 32>}, {transform_indices = @transform_1, window_bounds = array<i64: 1, 8, 32>}, {transform_indices = @transform_2, window_bounds = array<i64: 1, 8, 32>}, {pipeline_mode = #tpu.pipeline_mode<synchronous>, transform_indices = @transform_3, window_bounds = array<i64: 32, 32>}, {pipeline_mode = #tpu.pipeline_mode<synchronous>, transform_indices = @transform_4, window_bounds = array<i64: 32, 32>}, {pipeline_mode = #tpu.pipeline_mode<synchronous>, transform_indices = @transform_5, window_bounds = array<i64: 32, 32>}, {transform_indices = @transform_6, window_bounds = array<i64: 1, 8, 32>}]} {
    %c0 = arith.constant 0 : index
    %c0_0 = arith.constant 0 : index
    %c0_1 = arith.constant 0 : index
    %0 = vector.load %arg1[%c0, %c0_0, %c0_1] : memref<1x8x32xf32, #tpu.memory_space<vmem>>, vector<1x8x32xf32>
    %1 = vector.shape_cast %0 : vector<1x8x32xf32> to vector<8x32xf32>
    %c0_2 = arith.constant 0 : index
    %c0_3 = arith.constant 0 : index
    %2 = vector.load %arg4[%c0_2, %c0_3] : memref<32x32xf32, #tpu.memory_space<vmem>>, vector<32x32xf32>
    %cst = arith.constant dense<0.000000e+00> : vector<8x32xf32>
    %3 = tpu.matmul %1, %2, %cst {dimension_numbers = #tpu.dot_dimension_numbers<[1], [0], [0], [1], [0, 0, 1, 1], [], []>} : vector<8x32xf32>, vector<32x32xf32>, vector<8x32xf32> -> vector<8x32xf32>
    %c0_4 = arith.constant 0 : index
    %c0_5 = arith.constant 0 : index
    %c0_6 = arith.constant 0 : index
    %4 = vector.load %arg2[%c0_4, %c0_5, %c0_6] : memref<1x8x32xf32, #tpu.memory_space<vmem>>, vector<1x8x32xf32>
    %5 = vector.shape_cast %4 : vector<1x8x32xf32> to vector<8x32xf32>
    %c0_7 = arith.constant 0 : index
    %c0_8 = arith.constant 0 : index
    %6 = vector.load %arg5[%c0_7, %c0_8] : memref<32x32xf32, #tpu.memory_space<vmem>>, vector<32x32xf32>
    %cst_9 = arith.constant dense<0.000000e+00> : vector<8x32xf32>
    %7 = tpu.matmul %5, %6, %cst_9 {dimension_numbers = #tpu.dot_dimension_numbers<[1], [0], [0], [1], [0, 0, 1, 1], [], []>} : vector<8x32xf32>, vector<32x32xf32>, vector<8x32xf32> -> vector<8x32xf32>
    %c0_10 = arith.constant 0 : index
    %c0_11 = arith.constant 0 : index
    %c0_12 = arith.constant 0 : index
    %8 = vector.load %arg3[%c0_10, %c0_11, %c0_12] : memref<1x8x32xf32, #tpu.memory_space<vmem>>, vector<1x8x32xf32>
    %9 = vector.shape_cast %8 : vector<1x8x32xf32> to vector<8x32xf32>
    %c0_13 = arith.constant 0 : index
    %c0_14 = arith.constant 0 : index
    %10 = vector.load %arg6[%c0_13, %c0_14] : memref<32x32xf32, #tpu.memory_space<vmem>>, vector<32x32xf32>
    %cst_15 = arith.constant dense<0.000000e+00> : vector<8x32xf32>
    %11 = tpu.matmul %9, %10, %cst_15 {dimension_numbers = #tpu.dot_dimension_numbers<[1], [0], [0], [1], [0, 0, 1, 1], [], []>} : vector<8x32xf32>, vector<32x32xf32>, vector<8x32xf32> -> vector<8x32xf32>
    %12 = vector.extract_strided_slice %3 {offsets = [0, 0], sizes = [8, 8], strides = [1, 1]} : vector<8x32xf32> to vector<8x8xf32>
    %13 = vector.extract_strided_slice %7 {offsets = [0, 0], sizes = [8, 8], strides = [1, 1]} : vector<8x32xf32> to vector<8x8xf32>
    %cst_16 = arith.constant dense<0.000000e+00> : vector<8x8xf32>
    %14 = tpu.matmul %12, %13, %cst_16 {dimension_numbers = #tpu.dot_dimension_numbers<[1], [1], [0], [0], [0, 0, 1, 0], [], []>} : vector<8x8xf32>, vector<8x8xf32>, vector<8x8xf32> -> vector<8x8xf32>
    %cst_17 = arith.constant dense<0xFF800000> : vector<8xf32>
    %15 = vector.multi_reduction <maximumf>, %14, %cst_17 [1] : vector<8x8xf32> to vector<8xf32>
    %16 = vector.shape_cast %15 : vector<8xf32> to vector<8x1xf32>
    %17 = vector.broadcast %16 : vector<8x1xf32> to vector<8x8xf32>
    %18 = arith.subf %14, %17 : vector<8x8xf32>
    %19 = math.exp %18 : vector<8x8xf32>
    %cst_18 = arith.constant dense<0.000000e+00> : vector<8xf32>
    %20 = vector.multi_reduction <add>, %19, %cst_18 [1] : vector<8x8xf32> to vector<8xf32>
    %21 = vector.shape_cast %20 : vector<8xf32> to vector<8x1xf32>
    %22 = tpu.reciprocal %21 {approx = true} : vector<8x1xf32> -> vector<8x1xf32>
    %23 = vector.broadcast %22 : vector<8x1xf32> to vector<8x8xf32>
    %24 = arith.mulf %19, %23 : vector<8x8xf32>
    %25 = vector.extract_strided_slice %11 {offsets = [0, 0], sizes = [8, 8], strides = [1, 1]} : vector<8x32xf32> to vector<8x8xf32>
    %cst_19 = arith.constant dense<0.000000e+00> : vector<8x8xf32>
    %26 = tpu.matmul %24, %25, %cst_19 {dimension_numbers = #tpu.dot_dimension_numbers<[1], [0], [0], [1], [0, 0, 1, 1], [], []>} : vector<8x8xf32>, vector<8x8xf32>, vector<8x8xf32> -> vector<8x8xf32>
    %27 = vector.extract_strided_slice %3 {offsets = [0, 8], sizes = [8, 8], strides = [1, 1]} : vector<8x32xf32> to vector<8x8xf32>
    %28 = vector.extract_strided_slice %7 {offsets = [0, 8], sizes = [8, 8], strides = [1, 1]} : vector<8x32xf32> to vector<8x8xf32>
    %cst_20 = arith.constant dense<0.000000e+00> : vector<8x8xf32>
    %29 = tpu.matmul %27, %28, %cst_20 {dimension_numbers = #tpu.dot_dimension_numbers<[1], [1], [0], [0], [0, 0, 1, 0], [], []>} : vector<8x8xf32>, vector<8x8xf32>, vector<8x8xf32> -> vector<8x8xf32>
    %cst_21 = arith.constant dense<0xFF800000> : vector<8xf32>
    %30 = vector.multi_reduction <maximumf>, %29, %cst_21 [1] : vector<8x8xf32> to vector<8xf32>
    %31 = vector.shape_cast %30 : vector<8xf32> to vector<8x1xf32>
    %32 = vector.broadcast %31 : vector<8x1xf32> to vector<8x8xf32>
    %33 = arith.subf %29, %32 : vector<8x8xf32>
    %34 = math.exp %33 : vector<8x8xf32>
    %cst_22 = arith.constant dense<0.000000e+00> : vector<8xf32>
    %35 = vector.multi_reduction <add>, %34, %cst_22 [1] : vector<8x8xf32> to vector<8xf32>
    %36 = vector.shape_cast %35 : vector<8xf32> to vector<8x1xf32>
    %37 = tpu.reciprocal %36 {approx = true} : vector<8x1xf32> -> vector<8x1xf32>
    %38 = vector.broadcast %37 : vector<8x1xf32> to vector<8x8xf32>
    %39 = arith.mulf %34, %38 : vector<8x8xf32>
    %40 = vector.extract_strided_slice %11 {offsets = [0, 8], sizes = [8, 8], strides = [1, 1]} : vector<8x32xf32> to vector<8x8xf32>
    %cst_23 = arith.constant dense<0.000000e+00> : vector<8x8xf32>
    %41 = tpu.matmul %39, %40, %cst_23 {dimension_numbers = #tpu.dot_dimension_numbers<[1], [0], [0], [1], [0, 0, 1, 1], [], []>} : vector<8x8xf32>, vector<8x8xf32>, vector<8x8xf32> -> vector<8x8xf32>
    %42 = vector.extract_strided_slice %3 {offsets = [0, 16], sizes = [8, 8], strides = [1, 1]} : vector<8x32xf32> to vector<8x8xf32>
    %43 = vector.extract_strided_slice %7 {offsets = [0, 16], sizes = [8, 8], strides = [1, 1]} : vector<8x32xf32> to vector<8x8xf32>
    %cst_24 = arith.constant dense<0.000000e+00> : vector<8x8xf32>
    %44 = tpu.matmul %42, %43, %cst_24 {dimension_numbers = #tpu.dot_dimension_numbers<[1], [1], [0], [0], [0, 0, 1, 0], [], []>} : vector<8x8xf32>, vector<8x8xf32>, vector<8x8xf32> -> vector<8x8xf32>
    %cst_25 = arith.constant dense<0xFF800000> : vector<8xf32>
    %45 = vector.multi_reduction <maximumf>, %44, %cst_25 [1] : vector<8x8xf32> to vector<8xf32>
    %46 = vector.shape_cast %45 : vector<8xf32> to vector<8x1xf32>
    %47 = vector.broadcast %46 : vector<8x1xf32> to vector<8x8xf32>
    %48 = arith.subf %44, %47 : vector<8x8xf32>
    %49 = math.exp %48 : vector<8x8xf32>
    %cst_26 = arith.constant dense<0.000000e+00> : vector<8xf32>
    %50 = vector.multi_reduction <add>, %49, %cst_26 [1] : vector<8x8xf32> to vector<8xf32>
    %51 = vector.shape_cast %50 : vector<8xf32> to vector<8x1xf32>
    %52 = tpu.reciprocal %51 {approx = true} : vector<8x1xf32> -> vector<8x1xf32>
    %53 = vector.broadcast %52 : vector<8x1xf32> to vector<8x8xf32>
    %54 = arith.mulf %49, %53 : vector<8x8xf32>
    %55 = vector.extract_strided_slice %11 {offsets = [0, 16], sizes = [8, 8], strides = [1, 1]} : vector<8x32xf32> to vector<8x8xf32>
    %cst_27 = arith.constant dense<0.000000e+00> : vector<8x8xf32>
    %56 = tpu.matmul %54, %55, %cst_27 {dimension_numbers = #tpu.dot_dimension_numbers<[1], [0], [0], [1], [0, 0, 1, 1], [], []>} : vector<8x8xf32>, vector<8x8xf32>, vector<8x8xf32> -> vector<8x8xf32>
    %57 = vector.extract_strided_slice %3 {offsets = [0, 24], sizes = [8, 8], strides = [1, 1]} : vector<8x32xf32> to vector<8x8xf32>
    %58 = vector.extract_strided_slice %7 {offsets = [0, 24], sizes = [8, 8], strides = [1, 1]} : vector<8x32xf32> to vector<8x8xf32>
    %cst_28 = arith.constant dense<0.000000e+00> : vector<8x8xf32>
    %59 = tpu.matmul %57, %58, %cst_28 {dimension_numbers = #tpu.dot_dimension_numbers<[1], [1], [0], [0], [0, 0, 1, 0], [], []>} : vector<8x8xf32>, vector<8x8xf32>, vector<8x8xf32> -> vector<8x8xf32>
    %cst_29 = arith.constant dense<0xFF800000> : vector<8xf32>
    %60 = vector.multi_reduction <maximumf>, %59, %cst_29 [1] : vector<8x8xf32> to vector<8xf32>
    %61 = vector.shape_cast %60 : vector<8xf32> to vector<8x1xf32>
    %62 = vector.broadcast %61 : vector<8x1xf32> to vector<8x8xf32>
    %63 = arith.subf %59, %62 : vector<8x8xf32>
    %64 = math.exp %63 : vector<8x8xf32>
    %cst_30 = arith.constant dense<0.000000e+00> : vector<8xf32>
    %65 = vector.multi_reduction <add>, %64, %cst_30 [1] : vector<8x8xf32> to vector<8xf32>
    %66 = vector.shape_cast %65 : vector<8xf32> to vector<8x1xf32>
    %67 = tpu.reciprocal %66 {approx = true} : vector<8x1xf32> -> vector<8x1xf32>
    %68 = vector.broadcast %67 : vector<8x1xf32> to vector<8x8xf32>
    %69 = arith.mulf %64, %68 : vector<8x8xf32>
    %70 = vector.extract_strided_slice %11 {offsets = [0, 24], sizes = [8, 8], strides = [1, 1]} : vector<8x32xf32> to vector<8x8xf32>
    %cst_31 = arith.constant dense<0.000000e+00> : vector<8x8xf32>
    %71 = tpu.matmul %69, %70, %cst_31 {dimension_numbers = #tpu.dot_dimension_numbers<[1], [0], [0], [1], [0, 0, 1, 1], [], []>} : vector<8x8xf32>, vector<8x8xf32>, vector<8x8xf32> -> vector<8x8xf32>
    %72 = tpu.concatenate %26, %41, %56, %71 in 1 : vector<8x8xf32>, vector<8x8xf32>, vector<8x8xf32>, vector<8x8xf32> -> vector<8x32xf32>
    %c0_32 = arith.constant 0 : index
    %c0_33 = arith.constant 0 : index
    %c0_34 = arith.constant 0 : index
    %73 = vector.load %arg7[%c0_32, %c0_33, %c0_34] : memref<1x8x32xf32, #tpu.memory_space<vmem>>, vector<1x8x32xf32>
    %74 = vector.shape_cast %73 : vector<1x8x32xf32> to vector<8x32xf32>
    %75 = vector.shape_cast %72 : vector<8x32xf32> to vector<1x8x32xf32>
    tpu.vector_store %arg7[%c0_32, %c0_33, %c0_34], %75 {strides = array<i32>} : memref<1x8x32xf32, #tpu.memory_space<vmem>>, vector<1x8x32xf32>,
    return
  }
  func.func @transform_0(%arg0: i32) -> (i32, i32, i32) {
    %c0_i32 = arith.constant 0 : i32
    %c0_i32_0 = arith.constant 0 : i32
    %c0_i32_1 = arith.constant 0 : i32
    return %arg0, %c0_i32, %c0_i32_0 : i32, i32, i32
  }
  func.func @transform_1(%arg0: i32) -> (i32, i32, i32) {
    %c0_i32 = arith.constant 0 : i32
    %c0_i32_0 = arith.constant 0 : i32
    %c0_i32_1 = arith.constant 0 : i32
    return %arg0, %c0_i32, %c0_i32_0 : i32, i32, i32
  }
  func.func @transform_2(%arg0: i32) -> (i32, i32, i32) {
    %c0_i32 = arith.constant 0 : i32
    %c0_i32_0 = arith.constant 0 : i32
    %c0_i32_1 = arith.constant 0 : i32
    return %arg0, %c0_i32, %c0_i32_0 : i32, i32, i32
  }
  func.func @transform_3(%arg0: i32) -> (i32, i32) {
    %c0_i32 = arith.constant 0 : i32
    %c0_i32_0 = arith.constant 0 : i32
    %c0_i32_1 = arith.constant 0 : i32
    return %c0_i32, %c0_i32_0 : i32, i32
  }
  func.func @transform_4(%arg0: i32) -> (i32, i32) {
    %c0_i32 = arith.constant 0 : i32
    %c0_i32_0 = arith.constant 0 : i32
    %c0_i32_1 = arith.constant 0 : i32
    return %c0_i32, %c0_i32_0 : i32, i32
  }
  func.func @transform_5(%arg0: i32) -> (i32, i32) {
    %c0_i32 = arith.constant 0 : i32
    %c0_i32_0 = arith.constant 0 : i32
    %c0_i32_1 = arith.constant 0 : i32
    return %c0_i32, %c0_i32_0 : i32, i32
  }
  func.func @transform_6(%arg0: i32) -> (i32, i32, i32) {
    %c0_i32 = arith.constant 0 : i32
    %c0_i32_0 = arith.constant 0 : i32
    %c0_i32_1 = arith.constant 0 : i32
    return %arg0, %c0_i32, %c0_i32_0 : i32, i32, i32
  }
}

</mosaic_0001>

<bundles_post_ra>
// kernel: tpu_custom_call.1
= control target key start
LH: loop header
LB: loop body
LE: loop exit
PB: predicated region body
PF: predicated region fallthrough
CT: control target
= control target key end

     0   :  { %s2435_s0 = inlined_call_operand.hbm [shape: f32[2,8,32], index: 0, kind: input, shape index: {}]   ;;  %s2436_s1 = inlined_call_operand.hbm [shape: f32[2,8,32], index: 1, kind: input, shape index: {}]   ;;  %s2437_s2 = inlined_call_operand.hbm [shape: f32[2,8,32], index: 2, kind: input, shape index: {}]   ;;  %s2438_s3 = inlined_call_operand.hbm [shape: f32[32,32], index: 3, kind: input, shape index: {}]   ;;  %s2439_s4 = inlined_call_operand.hbm [shape: f32[32,32], index: 4, kind: input, shape index: {}]   ;;  %s2440_s5 = inlined_call_operand.hbm [shape: f32[32,32], index: 5, kind: input, shape index: {}]   ;;  %s2441_s6 = inlined_call_operand.hbm [shape: f32[2,8,32], index: 6, kind: output, shape index: {}]  }
   0x1   :  { %2464 = sst [smem:[#allocation24_spill]] %s2436_s1 }
   0x2   :  { %2465 = sst [smem:[#allocation25_spill]] %s2438_s3 }
   0x3   :  { %11 = vsyncpa [#allocation3], 0 }
   0x4   :  { %13 = vsyncpa [#allocation3 + $0x1], 0 }
   0x5   :  { %14 = vsyncpa [#allocation6], 0 }
   0x6   :  { %16 = vsyncpa [#allocation6 + $0x1], 0 }
   0x7   :  { %17 = vsyncpa [#allocation9], 0 }
   0x8   :  { %18 = vsyncpa [#allocation12], 0 }
   0x9   :  { %19 = vsyncpa [#allocation4], 0 }
   0xa   :  { %21 = vsyncpa [#allocation4 + $0x1], 0  ;;  %s2030_s21 = smov 0   ;;  %s2032_s22 = smov 0  }
   0xb   :  { %s2034_s23 = smov 0   ;;  %s2036_s24 = smov 0  }
   0xc LB: > { %2466 = sst [smem:[#allocation19_spill]] %s1963_s21  ;;  %s2051_s25 = sadd.s32 4294967295, %s1975_s24   ;;  %s1975_s24 = sphi %s2036_s24, %s2502_s24   ;;  %s1971_s23 = sphi %s2034_s23, %s2506_s23   ;;  %s1967_s22 = sphi %s2032_s22, %s2505_s22   ;;  %s1963_s21 = sphi %s2030_s21, %s2504_s21  }
   0xd   : > { %2467 = sst [smem:[#allocation20_spill]] %s1975_s24  ;;  %s1448_s26 = sadd.s32 4294967294, %s1975_s24  }
   0xe   : > { %p47_p0 = scmp.ne.s32.totalorder %s1967_s22, %s1963_s21  ;;  %p2442_p1 = scmp.eq.s32.totalorder %s2051_s25, 0 }
   0xf   : > { %p192_p3 = scmp.eq.s32.totalorder %s1448_s26, 1  ;;  %p1449_p5 = scmp.ge.s32.totalorder %s1975_s24, 1 }
  0x10   : > { %p2060_p4 = por %p2442_p1, %p47_p0  ;;  %p199_p7 = scmp.lt.s32.totalorder %s1975_s24, 3 }
  0x11   : > { %p2065_p6 = por %p192_p3, %p47_p0  ;;  %s1977_s30 = smov [#allocation8]  }
  0x12   : > { %s2468_s27 = scalar_select %p2060_p4, 1, 0 }
  0x13   : > { %s2469_s28 = scalar_select %p2065_p6, 1, 0 }
  0x14   : > { %p2070_p8 = pnand %p1449_p5, %p199_p7  ;;  %s211_s7 = sshll.u32 %s1977_s30, 4  ;;  %s2074_s7 = int_to_ptr.vmem [resolvable:$true] %s211_s7 }
  0x15   : > { %2470 = sst [smem:[#allocation21_spill]] %s2469_s28  ;;  %s2086_s9 = sadd.s32 1, %s1975_s24  }
  0x16   : > { %s2471_s29 = scalar_select %p2070_p8, 1, 0 }
  0x17   : > { %p1629_p9 = pneg %p2070_p8  ;;  %2473 = sst [smem:[#allocation22_spill]] %s2086_s9 }
  0x18   : > { %s34_s10 = sadd.s32 1, %s1971_s23  ;;  %s31_s11 = ssub.s32 %s1975_s24, %s2086_s9 }
  0x19   : > { %p2081_p11 = pnand %p1629_p9, %p2442_p1  ;;  %s2474_s3 = sld [smem:[#allocation25_spill]] }
  0x1b   : > { %s2472_s8 = scalar_select %p2081_p11, 1, 0 }
  0x1c   : > { %p2099_p13 = pneg %p2081_p11 }
  0x1e   : > { %s2475_s17 = scalar_select %p2099_p13, 1, 0 }
  0x1f   : > { %s1723_s14 = scalar_lea.hbm %s2474_s3, 512 }
  0x20   : > { %p1724_p12 = scmp.ne.s32.totalorder %s2474_s3, %s1723_s14  ;;  %p1730_p5 = scmp.lt.u32.totalorder %s1723_s14, %s2474_s3 }
  0x22   : > { %p1726_p0 = pnand %p2099_p13, %p1724_p12 }
  0x24   : > { %p1727_p3 = pneg %p1726_p0 }
  0x26   : > { %p1732_p7 = pnand %p1730_p5, %p1727_p3 }
  0x28   : > { %1735 = shalt.err (!%p1732_p7)
}
  0x29   : > { %s1736_s20 = scalar_lea.vmem %s2074_s7, 512  ;;  %p1744_p2 = scmp.lt.s32.totalorder %s2074_s7, %s2074_s7 }
  0x2a   : > { %p1737_p9 = scmp.ne.s32.totalorder %s2074_s7, %s1736_s20  ;;  %p1745_p6 = scmp.lt.s32.totalorder %s1736_s20, %s1736_s20 }
  0x2c   : > { %p1739_p10 = pnand %p1737_p9, %p2099_p13  ;;  %p1746_p12 = por %p1745_p6, %p1744_p2 }
  0x2e   : > { %p1740_p1 = pneg %p1739_p10 }
  0x30   : > { %p1747_p0 = pnand %p1746_p12, %p1740_p1 }
  0x32   : > { %1750 = shalt.err (!%p1747_p0)
}
  0x33   : > { %s2443_s26 = smov 128   ;;  %s2446_s30 = smov 8  }
  0x34   : > { %1632 = dma.hbm_to_vmem [thread:$0]  (!%p2081_p11), %s2474_s3, 512, %s2074_s7, [#allocation9], %s2443_s26, %s2443_s26, %s2446_s30  }
  0x35   : > { %p32_p1 = scmp.eq.s32.totalorder %s31_s11, 0  ;;  %p41_p2 = scmp.ne.s32.totalorder %s1971_s23, %s1967_s22 }
  0x36   : > { %p42_p6 = scmp.eq.s32.totalorder %s1975_s24, 0  ;;  %p1656_p10 = scmp.lt.s32.totalorder %s1975_s24, 2 }
  0x37   : > { %s2128_s14 = scalar_select %p32_p1, %s1971_s23, %s34_s10  }
  0x38   : > { %p43_p3 = por %p42_p6, %p41_p2  ;;  %p2477_p5 = scmp.eq.s32.totalorder %s2051_s25, 1 }
  0x39   : > { %2476 = sst [smem:[#allocation23_spill]] %s2128_s14  ;;  %s2445_s16 = sand.u32 1, %s1971_s23  }
  0x3a   : > { %p2132_p7 = por %p2477_p5, %p41_p2  ;;  %s2138_s18 = sshll.u32 %s1975_s24, 7 }
  0x3b   : > { %s2142_s19 = sshll.u32 %s2445_s16, 3  ;;  %p2144_p9 = pnand %p1656_p10, %p43_p3 }
  0x3c   : > { %s2478_s15 = scalar_select %p2132_p7, 1, 0 }
  0x3d   : > { %s2479_s7 = scalar_select %p2144_p9, 1, 0 }
  0x3e   : > { %s269_s10 = sand.u32 1, %s1975_s24   ;;  %s2480_s1 = sld [smem:[#allocation24_spill]] }
  0x3f   : > { %s273_s13 = scalar_lea.vmem [#allocation5], %s2142_s19  ;;  %s2158_s16 = scalar_lea.sflag [#allocation6], %s269_s10 }
  0x40   : > { %s280_s26 = sshll.u32 %s273_s13, 4  ;;  %p2164_p0 = pneg %p2144_p9  ;;  %s2156_s26 = int_to_ptr.vmem [resolvable:$true] %s280_s26 }
  0x42   : > { %s2481_s3 = scalar_select %p2164_p0, 1, 0 }
  0x44   : > { %s2153_s12 = scalar_lea.hbm %s2480_s1, %s2138_s18  ;;  %s1756_s14 = scalar_lea.hbm %s2480_s1, 256 }
  0x45   : > { %s1751_s30 = scalar_lea.hbm %s2153_s12, 128  ;;  %p1757_p6 = scmp.lt.u32.totalorder %s2153_s12, %s2480_s1 }
  0x46   : > { %p1752_p12 = scmp.ne.s32.totalorder %s2153_s12, %s1751_s30  ;;  %p1758_p10 = scmp.lt.u32.totalorder %s1756_s14, %s1751_s30 }
  0x47   : > { %p1760_p5 = scmp.lt.u32.totalorder %s1751_s30, %s2153_s12 }
  0x48   : > { %p1754_p1 = pnand %p2164_p0, %p1752_p12  ;;  %p1759_p3 = por %p1758_p10, %p1757_p6 }
  0x4a   : > { %p1755_p2 = pneg %p1754_p1  ;;  %p1761_p7 = por %p1760_p5, %p1759_p3 }
  0x4c   : > { %p1762_p4 = pnand %p1761_p7, %p1755_p2 }
  0x4e   : > { %1765 = shalt.err (!%p1762_p4)
}
  0x4f   : > { %s1766_s10 = scalar_lea.vmem %s2156_s26, 128  ;;  %s1980_s11 = smov [#allocation5]  }
  0x50   : > { %p1767_p12 = scmp.ne.s32.totalorder %s2156_s26, %s1766_s10  ;;  %s1771_s20 = sshll.u32 %s1980_s11, 4  ;;  %s1772_s20 = int_to_ptr.vmem [resolvable:$false] %s1771_s20 }
  0x51   : > { %s1773_s9 = scalar_lea.vmem %s1772_s20, 256  ;;  %p1774_p11 = scmp.lt.s32.totalorder %s2156_s26, %s1772_s20 }
  0x52   : > { %p1769_p1 = pnand %p1767_p12, %p2164_p0  ;;  %p1775_p13 = scmp.lt.s32.totalorder %s1773_s9, %s1766_s10 }
  0x54   : > { %p1770_p8 = pneg %p1769_p1  ;;  %p1776_p6 = por %p1775_p13, %p1774_p11 }
  0x56   : > { %p1777_p10 = pnand %p1776_p6, %p1770_p8 }
  0x58   : > { %1780 = shalt.err (!%p1777_p10)
}
  0x59   : > { %1645 = dma.hbm_to_vmem [thread:$0]  (!%p2144_p9), %s2153_s12, 128, %s2156_s26, %s2158_s16  }
  0x5a   : > { %s1981_s30 = smov [#allocation10]   ;;  %s1982_s13 = smov [#allocation11]  }
  0x5b   : > { %s224_s14 = sshll.u32 %s1981_s30, 4  ;;  %s237_s1 = sshll.u32 %s1982_s13, 4  ;;  %s225_s14 = int_to_ptr.vmem [resolvable:$true] %s224_s14  ;;  %s238_s1 = int_to_ptr.vmem [resolvable:$true] %s237_s1 }
  0x5c   : > { %s1781_s20 = scalar_lea.hbm %s2439_s4, 512  ;;  %p2482_p8 = scmp.ne.s32.totalorder %s2475_s17, 0 }
  0x5d   : > { %p1782_p4 = scmp.ne.s32.totalorder %s2439_s4, %s1781_s20  ;;  %p1788_p7 = scmp.lt.u32.totalorder %s1781_s20, %s2439_s4 }
  0x5f   : > { %p1784_p11 = pnand %p1782_p4, %p2482_p8 }
  0x61   : > { %p1785_p13 = pneg %p1784_p11 }
  0x63   : > { %p1790_p2 = pnand %p1788_p7, %p1785_p13 }
  0x65   : > { %1793 = shalt.err (!%p1790_p2)
}
  0x66   : > { %s1794_s26 = scalar_lea.vmem %s225_s14, 512  ;;  %p1802_p1 = scmp.lt.s32.totalorder %s225_s14, %s225_s14 }
  0x67   : > { %p1795_p3 = scmp.ne.s32.totalorder %s225_s14, %s1794_s26  ;;  %p1803_p6 = scmp.lt.s32.totalorder %s1794_s26, %s1794_s26 }
  0x69   : > { %p1797_p5 = pnand %p1795_p3, %p2482_p8  ;;  %p1804_p10 = por %p1803_p6, %p1802_p1 }
  0x6b   : > { %p1798_p12 = pneg %p1797_p5 }
  0x6d   : > { %p1805_p9 = pnand %p1804_p10, %p1798_p12 }
  0x6f   : > { %1808 = shalt.err (!%p1805_p9)
}
  0x70   : > { %p2483_p4 = scmp.ne.s32.totalorder %s2472_s8, 0  ;;  %s2484_s24 = smov 8  }
  0x71   : > { %s2485_s12 = smov 128   ;;  %s1809_s11 = scalar_lea.hbm %s2440_s5, 512 }
  0x72   : > { %1635 = dma.hbm_to_vmem [thread:$0]  (!%p2483_p4), %s2439_s4, 512, %s225_s14, [#allocation9], %s2485_s12, %s2485_s12, %s2484_s24  }
  0x73   : > { %p1810_p11 = scmp.ne.s32.totalorder %s2440_s5, %s1809_s11  ;;  %p1816_p7 = scmp.lt.u32.totalorder %s1809_s11, %s2440_s5 }
  0x75   : > { %p1812_p9 = pnand %p1810_p11, %p2482_p8 }
  0x77   : > { %p1813_p13 = pneg %p1812_p9 }
  0x79   : > { %p1818_p2 = pnand %p1816_p7, %p1813_p13 }
  0x7b   : > { %1821 = shalt.err (!%p1818_p2)
}
  0x7c   : > { %s1822_s21 = scalar_lea.vmem %s238_s1, 512  ;;  %p1830_p1 = scmp.lt.s32.totalorder %s238_s1, %s238_s1 }
  0x7d   : > { %p1823_p3 = scmp.ne.s32.totalorder %s238_s1, %s1822_s21  ;;  %p1831_p6 = scmp.lt.s32.totalorder %s1822_s21, %s1822_s21 }
  0x7f   : > { %p1825_p5 = pnand %p1823_p3, %p2482_p8  ;;  %p1832_p10 = por %p1831_p6, %p1830_p1 }
  0x81   : > { %p1826_p12 = pneg %p1825_p5 }
  0x83   : > { %p1833_p0 = pnand %p1832_p10, %p1826_p12 }
  0x85   : > { %1836 = shalt.err (!%p1833_p0)
}
  0x86   : > { %1638 = dma.hbm_to_vmem [thread:$0]  (!%p2483_p4), %s2440_s5, 512, %s238_s1, [#allocation12], %s2485_s12, %s2485_s12, %s2484_s24  }
  0x87   : > { %s2234_s13 = scalar_lea.hbm %s2435_s0, %s2138_s18  ;;  %s255_s8 = scalar_lea.vmem [#allocation2], %s2142_s19 }
  0x88   : > { %s262_s11 = sshll.u32 %s255_s8, 4  ;;  %s2243_s9 = scalar_lea.hbm %s2437_s2, %s2138_s18  ;;  %s2237_s11 = int_to_ptr.vmem [resolvable:$true] %s262_s11 }
  0x89   : > { %s2486_s26 = sand.u32 1, %s1971_s23   ;;  %s1837_s24 = scalar_lea.hbm %s2234_s13, 128 }
  0x8a   : > { %s252_s1 = scalar_lea.sflag [#allocation3], %s2486_s26  ;;  %p1838_p0 = scmp.ne.s32.totalorder %s2234_s13, %s1837_s24 }
  0x8b   : > { %p2487_p8 = scmp.ne.s32.totalorder %s2481_s3, 0  ;;  %s1842_s14 = scalar_lea.hbm %s2435_s0, 256 }
  0x8c   : > { %p1843_p9 = scmp.lt.u32.totalorder %s2234_s13, %s2435_s0  ;;  %p1844_p13 = scmp.lt.u32.totalorder %s1842_s14, %s1837_s24 }
  0x8d   : > { %p1840_p4 = pnand %p1838_p0, %p2487_p8  ;;  %p1846_p2 = scmp.lt.u32.totalorder %s1837_s24, %s2234_s13 }
  0x8e   : > { %p1845_p7 = por %p1844_p13, %p1843_p9 }
  0x8f   : > { %p1841_p11 = pneg %p1840_p4 }
  0x90   : > { %p1847_p3 = por %p1846_p2, %p1845_p7 }
  0x92   : > { %p1848_p5 = pnand %p1847_p3, %p1841_p11 }
  0x94   : > { %1851 = shalt.err (!%p1848_p5)
}
  0x95   : > { %s1852_s18 = scalar_lea.vmem %s2237_s11, 128  ;;  %s1983_s30 = smov [#allocation2]  }
  0x96   : > { %p1853_p12 = scmp.ne.s32.totalorder %s2237_s11, %s1852_s18  ;;  %s1857_s8 = sshll.u32 %s1983_s30, 4  ;;  %s1858_s8 = int_to_ptr.vmem [resolvable:$false] %s1857_s8 }
  0x97   : > { %s1859_s20 = scalar_lea.vmem %s1858_s8, 256  ;;  %p1860_p10 = scmp.lt.s32.totalorder %s2237_s11, %s1858_s8 }
  0x98   : > { %p1855_p1 = pnand %p1853_p12, %p2487_p8  ;;  %p1861_p0 = scmp.lt.s32.totalorder %s1859_s20, %s1852_s18 }
  0x9a   : > { %p1856_p6 = pneg %p1855_p1  ;;  %p1862_p4 = por %p1861_p0, %p1860_p10 }
  0x9c   : > { %p1863_p9 = pnand %p1862_p4, %p1856_p6 }
  0x9e   : > { %1866 = shalt.err (!%p1863_p9)
}
  0x9f   : > { %p2488_p11 = scmp.ne.s32.totalorder %s2479_s7, 0  ;;  %s291_s10 = scalar_lea.vmem [#allocation7], %s2142_s19 }
  0xa0   : > { %s298_s26 = sshll.u32 %s291_s10, 4  ;;  %s1867_s24 = scalar_lea.hbm %s2243_s9, 128  ;;  %s299_s26 = int_to_ptr.vmem [resolvable:$true] %s298_s26 }
  0xa1   : > { %1642 = dma.hbm_to_vmem [thread:$0]  (!%p2488_p11), %s2234_s13, 128, %s2237_s11, %s252_s1  }
  0xa2   : > { %p1868_p13 = scmp.ne.s32.totalorder %s2243_s9, %s1867_s24  ;;  %s1872_s14 = scalar_lea.hbm %s2437_s2, 256 }
  0xa3   : > { %p1873_p3 = scmp.lt.u32.totalorder %s2243_s9, %s2437_s2  ;;  %p1874_p5 = scmp.lt.u32.totalorder %s1872_s14, %s1867_s24 }
  0xa4   : > { %p1870_p7 = pnand %p1868_p13, %p2487_p8  ;;  %p1876_p1 = scmp.lt.u32.totalorder %s1867_s24, %s2243_s9 }
  0xa5   : > { %p1875_p12 = por %p1874_p5, %p1873_p3 }
  0xa6   : > { %p1871_p2 = pneg %p1870_p7 }
  0xa7   : > { %p1877_p6 = por %p1876_p1, %p1875_p12 }
  0xa9   : > { %p1878_p10 = pnand %p1877_p6, %p1871_p2 }
  0xab   : > { %1881 = shalt.err (!%p1878_p10)
}
  0xac   : > { %s1882_s19 = scalar_lea.vmem %s299_s26, 128  ;;  %s1984_s13 = smov [#allocation7]  }
  0xad   : > { %p1883_p0 = scmp.ne.s32.totalorder %s299_s26, %s1882_s19  ;;  %s1887_s11 = sshll.u32 %s1984_s13, 4  ;;  %s1888_s11 = int_to_ptr.vmem [resolvable:$false] %s1887_s11 }
  0xae   : > { %s1889_s1 = scalar_lea.vmem %s1888_s11, 256  ;;  %p1890_p13 = scmp.lt.s32.totalorder %s299_s26, %s1888_s11 }
  0xaf   : > { %p1885_p4 = pnand %p1883_p0, %p2487_p8  ;;  %p1891_p7 = scmp.lt.s32.totalorder %s1889_s1, %s1882_s19 }
  0xb1   : > { %p1886_p9 = pneg %p1885_p4  ;;  %p1892_p11 = por %p1891_p7, %p1890_p13 }
  0xb3   : > { %p1893_p3 = pnand %p1892_p11, %p1886_p9 }
  0xb5   : > { %1896 = shalt.err (!%p1893_p3)
}
  0xb6   : > { %p2489_p5 = scmp.ne.s32.totalorder %s2479_s7, 0  ;;  %p2490_p2 = scmp.ne.s32.totalorder %s2471_s29, 0 }
  0xb7   : > { %s2290_s3 = sand.u32 (!%p2490_p2), 1, %s1967_s22   ;;  %p2491_p8 = scmp.ne.s32.totalorder (!%p2490_p2), %s2468_s27, 0 }
  0xb8   : > { %1648 = dma.hbm_to_vmem [thread:$0]  (!%p2489_p5), %s2243_s9, 128, %s299_s26, %s2158_s16  }
  0xb9   : > { %307 = sbr.rel (%p2490_p2) target bundleno = 1420 (0x58c), region = 44  ;;  %s2293_s18 = sshll.u32 (!%p2490_p2), %s2290_s3, 3 }
  0xba   : > { %s310_s30 = scalar_lea.sflag (!%p2490_p2), [#allocation3], %s2290_s3  ;;  %s313_s8 = scalar_lea.vmem (!%p2490_p2), [#allocation2], %s2293_s18 }
  0xc0   : > { %1942 = dma.done.wait (%p2491_p8), %s310_s30, 128  }
  0xc1   : > { %1944 = vsyncadd (%p2491_p8), %s310_s30, 4294967168  ;;  %s318_s29 = sand.u32 1, %s2051_s25   ;;  %s322_s7 = scalar_lea.vmem [#allocation5], %s2293_s18 }
  0xc2   : > { %s319_s16 = scalar_lea.sflag [#allocation6], %s318_s29 }
  0xc3   : > { %1946 = dma.done.wait (%p2491_p8), %s319_s16, 256  }
  0xc4   : > { %1948 = vsyncadd (%p2491_p8), %s319_s16, 4294967040  ;;  %s331_s9 = scalar_lea.vmem [#allocation7], %s2293_s18  ;;  %p2492_p11 = scmp.eq.s32.totalorder %s2051_s25, 0 }
  0xc6   : > { %1950 = dma.done.wait (%p2492_p11), [#allocation9], 1024   ;;  %p2493_p12 = pmov %p2492_p11 }
  0xc7   : > { %p2494_p1 = pmov %p2492_p11 }
  0xc8   : > { %1952 = vsyncadd (%p2493_p12), [#allocation9], 4294966272 }
  0xc9   : > { %1954 = dma.done.wait (%p2494_p1), [#allocation12], 512   ;;  %p2495_p6 = pmov %p2494_p1 }
  0xca   : > { %v1985_v0 = vmov 0.0|0.0   ;;  %vm1986_vm0 = vmmov 0   ;;  %v1987_v1 = vmov 0.0   ;;  %v462_v2 = vld [vmem:[#allocation10] sm:$0xff]  ;;  %v463_v3 = vld [vmem:[#allocation10 + $0x8] sm:$0xff]  ;;  %v464_v7 = vld [vmem:[#allocation10 + $0x10] sm:$0xff] }
  0xcb   : > { %1956 = vsyncadd (%p2495_p6), [#allocation12], 4294966784  ;;  %1597 = vmatprep.subr.bf16.mxu1 %v1985_v0  ;;  %1591 = vmatprep.subr.bf16.mxu0 %v1985_v0  ;;  %v383_v4 = vld [vmem:[#allocation8] sm:$0xff]  ;;  %v1598_v5 = vpack.c.bf16 %v463_v3, %v462_v2  ;;  %v384_v6 = vld [vmem:[#allocation8 + $0x8] sm:$0xff]  ;;  %vm387_vm1 = vcmask 261120   ;;  %vm617_vm2 = vcmask 64512  }
  0xcc   : > { %1537 = vmatprep.mubr.msk.f32.mxu1 %vm1986_vm0, %v1987_v1  ;;  %1526 = vmatprep.mubr.msk.f32.mxu0 %vm1986_vm0, %v1987_v1  ;;  %v465_v8 = vld [vmem:[#allocation10 + $0x18] sm:$0xff]  ;;  %v1592_v9 = vpack.c.bf16 %v384_v6, %v383_v4  ;;  %v385_v10 = vld [vmem:[#allocation8 + $0x10] sm:$0xff]  ;;  %v461_v14 = vld [vmem:[%s322_s7] sm:$0xff]  ;;  %s1988_s27 = smov 112   ;;  %s1989_s20 = smov 120   ;;  %vm1287_vm3 = vcmask 130048  }
  0xcd   : > { %v386_v11 = vld [vmem:[#allocation8 + $0x18] sm:$0xff]  ;;  %1599 = vmatpush3.bf16.msra.mxu1 %v1598_v5  ;;  %v1601_v12 = vpack.c.bf16 %v465_v8, %v464_v7  ;;  %v540_v16 = vld [vmem:[#allocation11] sm:$0xff]  ;;  %v541_v17 = vld [vmem:[#allocation11 + $0x8] sm:$0xff]  ;;  %s1990_s10 = smov 104   ;;  %s1991_s26 = smov 8   ;;  %vm1289_vm4 = vcmask 195584  }
  0xce   : > { %1593 = vmatpush3.bf16.msra.mxu0 %v1592_v9  ;;  %1600 = vmatprep.subr.bf16.mxu1 %v1985_v0  ;;  %v1595_v13 = vpack.c.bf16 %v386_v11, %v385_v10  ;;  %v382_v15 = vld [vmem:[%s313_s8] sm:$0xff]  ;;  %v1604_v19 = vpack.c.bf16 %v541_v17, %v540_v16  ;;  %s1992_s24 = smov 16   ;;  %s1993_s12 = smov 24  }
  0xcf   : > { %1594 = vmatprep.subr.bf16.mxu0 %v1985_v0  ;;  %v542_v18 = vld [vmem:[#allocation11 + $0x10] sm:$0xff]  ;;  %v543_v20 = vld [vmem:[#allocation11 + $0x18] sm:$0xff]  ;;  %s1484_s21 = sshll.u32 %s2051_s25, 7  ;;  %s381_s14 = scalar_lea.vmem [#allocation13], %s2293_s18 }
  0xd0   : > { %v1607_v21 = vpack.c.bf16 %v543_v20, %v542_v18  ;;  %v539_v22 = vld [vmem:[%s331_s9] sm:$0xff]  ;;  %s1306_s28 = sshll.u32 %s381_s14, 4  ;;  %s2390_s13 = scalar_lea.hbm %s2441_s6, %s1484_s21  ;;  %s2392_s28 = int_to_ptr.vmem [resolvable:$true] %s1306_s28 }
  0xd1   : > { %1602 = vmatpush3.bf16.msra.mxu1 %v1601_v12  ;;  %s1293_s25 = scalar_lea.sflag [#allocation4], %s2290_s3  ;;  %s1897_s11 = scalar_lea.vmem %s2392_s28, 128 }
  0xd2   : > { %1596 = vmatpush3.bf16.msra.mxu0 %v1595_v13  ;;  %1551 = vmatprep.subr.mxu1 %v1987_v1  ;;  %p1898_p10 = scmp.ne.s32.totalorder %s2392_s28, %s1897_s11  ;;  %p2496_p0 = scmp.ne.s32.totalorder %s2478_s15, 0 }
  0xd3   : > { %1603 = vmatprep.subr.bf16.mxu0 %v1985_v0  ;;  %s1994_s1 = smov [#allocation13]  }
  0xd4   : > { %1538 = vmatmul.mubr.msk.f32.vlgmr.msra.gmra.mrb[0].mxu1 %vm387_vm1, %v461_v14  ;;  %p1899_p4 = pnand %p1898_p10, %p2496_p0  ;;  %s1901_s18 = sshll.u32 %s1994_s1, 4  ;;  %s1902_s18 = int_to_ptr.vmem [resolvable:$false] %s1901_s18 }
  0xd5   : > { %1527 = vmatmul.mubr.msk.f32.vlgmr.msra.gmra.mrb[0].mxu0 %vm387_vm1, %v382_v15  ;;  %1553 = vmatprep.mubr.msk.f32.mxu1 %vm1986_vm0, %v1987_v1  ;;  %s1903_s30 = scalar_lea.vmem %s1902_s18, 256  ;;  %p1904_p13 = scmp.lt.s32.totalorder %s2392_s28, %s1902_s18 }
  0xd6   : > { %1548 = vmatprep.mubr.msk.f32.mxu0 %vm1986_vm0, %v1987_v1  ;;  %1605 = vmatpush3.bf16.msra.mxu0 %v1604_v19  ;;  %p1900_p9 = pneg %p1899_p4  ;;  %p1905_p7 = scmp.lt.s32.totalorder %s1903_s30, %s1897_s11 }
  0xd7   : > { %1606 = vmatprep.subr.bf16.mxu0 %v1985_v0 }
  0xd8   : > { %p1906_p3 = por %p1905_p7, %p1904_p13 }
  0xda   : > { %1608 = vmatpush3.bf16.msra.mxu0 %v1607_v21  ;;  %p1907_p5 = pnand %p1906_p3, %p1900_p9 }
  0xdb   : > { %1561 = vmatprep.subr.mxu0 %v1987_v1 }
  0xdd   : > { %1549 = vmatmul.mubr.msk.f32.vlgmr.msra.gmra.mrb[2].mxu0 %vm387_vm1, %v539_v22 }
  0xde   : > { %1563 = vmatprep.mubr.msk.f32.mxu0 %vm1986_vm0, %v1987_v1 }
 0x1a7   : > { %v535_v23 = vpop.f32.mrb[0].mxu1 }
 0x1a8   : > { %946 = vrot.lane.b32.xlu1 %v535_v23, %s1988_s27  ;;  %780 = vrot.lane.b32.xlu0 %v535_v23, %s1989_s20  ;;  %v1539_v24 = vpop.f32.mrb[1].mxu1  ;;  %v457_v25 = vpop.f32.mrb[0].mxu0 }
 0x1a9   : > { %1552 = vmatpush3.xpose.msk.msra.mxu1 %vm617_vm2, %v535_v23  ;;  %v1528_v26 = vpop.f32.mrb[1].mxu0 }
 0x1aa   : > { %1556 = vmatprep.subr.mxu1 %v1987_v1 }
 0x1ac   : > { %1554 = vmatmul.mubr.msk.f32.vlgmr.msra.gmra.mrb[2].mxu1 %vm617_vm2, %v457_v25  ;;  %944 = vrot.lane.b32.xlu1 %v457_v25, %s1988_s27 }
 0x1ad   : > { %778 = vrot.lane.b32.xlu0 %v457_v25, %s1989_s20  ;;  %1558 = vmatprep.mubr.msk.f32.mxu1 %vm1986_vm0, %v1987_v1 }
 0x1b0   : > { %1109 = vrot.lane.b32.xlu1 %v457_v25, %s1990_s10  ;;  %v613_v33 = vpop.f32.mrb[2].mxu0 }
 0x1b1   : > { %1111 = vrot.lane.b32.xlu0 %v535_v23, %s1990_s10  ;;  %v1550_v34 = vpop.f32.mrb[3].mxu0  ;;  %1557 = vmatpush3.msra.mxu1 %v613_v33 }
 0x1b2   : > { %1566 = vmatprep.subr.mxu1 %v1987_v1 }
 0x21a   : > { %v781_v27 = vpop.permute.xlu0 %780  ;;  %v947_v28 = vpop.permute.xlu1 %946 }
 0x21b   : > { %1562 = vmatpush3.xpose.msk.msra.mxu0 %vm617_vm2, %v781_v27 }
 0x21c   : > { %1571 = vmatprep.subr.mxu0 %v1987_v1 }
 0x21e   : > { %v945_v30 = vpop.permute.xlu1 %944 }
 0x21f   : > { %v779_v29 = vpop.permute.xlu0 %778 }
 0x220   : > { %1564 = vmatmul.mubr.msk.f32.vlgmr.msra.gmra.mrb[4].mxu0 %vm617_vm2, %v779_v29 }
 0x221   : > { %1572 = vmatpush3.xpose.msk.msra.mxu0 %vm617_vm2, %v947_v28  ;;  %1573 = vmatprep.mubr.msk.f32.mxu0 %vm1986_vm0, %v1987_v1 }
 0x222   : > { %1581 = vmatprep.subr.mxu0 %v1987_v1  ;;  %v1110_v32 = vpop.permute.xlu1 %1109 }
 0x223   : > { %v1112_v31 = vpop.permute.xlu0 %1111 }
 0x224   : > { %1574 = vmatmul.mubr.msk.f32.vlgmr.msra.gmra.mrb[6].mxu0 %vm617_vm2, %v945_v30 }
 0x225   : > { %1582 = vmatpush3.xpose.msk.msra.mxu0 %vm617_vm2, %v1112_v31  ;;  %1583 = vmatprep.mubr.msk.f32.mxu0 %vm1986_vm0, %v1987_v1 }
 0x228   : > { %1584 = vmatmul.mubr.msk.f32.vlgmr.msra.gmra.mrb[8].mxu0 %vm617_vm2, %v1110_v32 }
 0x27f   : > { %v690_v35 = vpop.f32.mrb[2].mxu1 }
 0x280   : > { %v1555_v36 = vpop.f32.mrb[3].mxu1  ;;  %v694_v37 = vsel %vm617_vm2, %v690_v35, -inf }
 0x281   : > { %695 = vmax.xlane.f32.xlu0 %v694_v37 }
 0x2f3   : > { %v852_v38 = vpop.f32.mrb[4].mxu0 }
 0x2f4   : > { %v1565_v39 = vpop.f32.mrb[5].mxu0  ;;  %v856_v40 = vsel %vm617_vm2, %v852_v38, -inf }
 0x2f5   : > { %857 = vmax.xlane.f32.xlu1 %v856_v40 }
 0x2f7   : > { %v1018_v41 = vpop.f32.mrb[6].mxu0 }
 0x2f8   : > { %v1575_v42 = vpop.f32.mrb[7].mxu0  ;;  %v1022_v43 = vsel %vm617_vm2, %v1018_v41, -inf }
 0x2f9   : > { %1023 = vmax.xlane.f32.xlu0 %v1022_v43 }
 0x2fb   : > { %v1183_v44 = vpop.f32.mrb[8].mxu0 }
 0x2fc   : > { %v1585_v45 = vpop.f32.mrb[9].mxu0  ;;  %v1187_v46 = vsel %vm617_vm2, %v1183_v44, -inf }
 0x2fd   : > { %1188 = vmax.xlane.f32.xlu0 %v1187_v46 }
 0x306   : > { %868 = vrot.lane.b32.xlu1 %v613_v33, %s1989_s20 }
 0x30e   : > { %v696_v47 = vpop.xlane.xlu0 %695 }
 0x30f   : > { %v697_v48 = vsub.f32 %v690_v35, %v696_v47 }
 0x311   : > { %v698_v49 = vmul.f32 1.442695, %v697_v48 }
 0x313   : > { %1707 = vpow2.f32 %v698_v49 }
 0x31d   : > { %v1708_v50 = vpop.eup %1707 }
 0x31e   : > { %v700_v51 = vsel %vm617_vm2, %v1708_v50, 0.0 }
 0x32a   : > { %701 = vadd.xlane.f32.xlu1 %v700_v51 }
 0x382   : > { %v858_v52 = vpop.xlane.xlu1 %857 }
 0x383   : > { %v859_v53 = vsub.f32 %v852_v38, %v858_v52 }
 0x385   : > { %v860_v54 = vmul.f32 1.442695, %v859_v53 }
 0x386   : > { %v1024_v55 = vpop.xlane.xlu0 %1023  ;;  %v869_v4 = vpop.permute.xlu1 %868 }
 0x387   : > { %1709 = vpow2.f32 %v860_v54  ;;  %v1025_v56 = vsub.f32 %v1018_v41, %v1024_v55 }
 0x389   : > { %v1026_v57 = vmul.f32 1.442695, %v1025_v56 }
 0x38a   : > { %v1189_v58 = vpop.xlane.xlu0 %1188 }
 0x38b   : > { %1711 = vpow2.f32 %v1026_v57  ;;  %v1190_v59 = vsub.f32 %v1183_v44, %v1189_v58 }
 0x38d   : > { %v1191_v60 = vmul.f32 1.442695, %v1190_v59 }
 0x38f   : > { %1713 = vpow2.f32 %v1191_v60 }
 0x391   : > { %v1710_v61 = vpop.eup %1709 }
 0x392   : > { %v862_v62 = vsel %vm617_vm2, %v1710_v61, 0.0 }
 0x393   : > { %863 = vadd.xlane.f32.xlu0 %v862_v62 }
 0x395   : > { %v1712_v63 = vpop.eup %1711 }
 0x396   : > { %v1028_v0 = vsel %vm617_vm2, %v1712_v63, 0.0 }
 0x397   : > { %1029 = vadd.xlane.f32.xlu1 %v1028_v0 }
 0x399   : > { %v1714_v2 = vpop.eup %1713 }
 0x39a   : > { %v1193_v3 = vsel %vm617_vm2, %v1714_v2, 0.0 }
 0x39b   : > { %1194 = vadd.xlane.f32.xlu0 %v1193_v3 }
 0x3a8   : > { %1198 = vrot.lane.b32.xlu1 %v613_v33, %s1990_s10 }
 0x3b1   : > { %1033 = vrot.lane.b32.xlu0 %v613_v33, %s1988_s27 }
 0x3b7   : > { %v702_v5 = vpop.xlane.xlu1 %701 }
 0x3b8   : > { %1715 = vrcp.f32 %v702_v5 }
 0x3c2   : > { %v1716_v6 = vpop.eup %1715 }
 0x3c3   : > { %v704_v7 = vmul.f32 %v1716_v6, %v1708_v50 }
 0x3c5   : > { %1559 = vmatmul.mubr.msk.f32.vlgmr.msra.gmra.mrb[4].mxu1 %vm617_vm2, %v704_v7 }
 0x3c6   : > { %1567 = vmatpush3.msra.mxu1 %v869_v4  ;;  %1568 = vmatprep.mubr.msk.f32.mxu1 %vm1986_vm0, %v1987_v1 }
 0x3c7   : > { %1576 = vmatprep.subr.mxu1 %v1987_v1 }
 0x420   : > { %v864_v8 = vpop.xlane.xlu0 %863 }
 0x421   : > { %1717 = vrcp.f32 %v864_v8 }
 0x424   : > { %v1030_v9 = vpop.xlane.xlu1 %1029 }
 0x425   : > { %1719 = vrcp.f32 %v1030_v9 }
 0x428   : > { %v1195_v10 = vpop.xlane.xlu0 %1194  ;;  %v1199_v16 = vpop.permute.xlu1 %1198 }
 0x429   : > { %1721 = vrcp.f32 %v1195_v10 }
 0x42b   : > { %v1718_v11 = vpop.eup %1717 }
 0x42c   : > { %v866_v12 = vmul.f32 %v1718_v11, %v1710_v61  ;;  %v1034_v13 = vpop.permute.xlu0 %1033 }
 0x42e   : > { %1569 = vmatmul.mubr.msk.f32.vlgmr.msra.gmra.mrb[6].mxu1 %vm617_vm2, %v866_v12 }
 0x42f   : > { %v1720_v14 = vpop.eup %1719  ;;  %1577 = vmatpush3.msra.mxu1 %v1034_v13  ;;  %1578 = vmatprep.mubr.msk.f32.mxu1 %vm1986_vm0, %v1987_v1 }
 0x430   : > { %v1032_v15 = vmul.f32 %v1720_v14, %v1712_v63  ;;  %1586 = vmatprep.subr.mxu1 %v1987_v1 }
 0x432   : > { %1579 = vmatmul.mubr.msk.f32.vlgmr.msra.gmra.mrb[8].mxu1 %vm617_vm2, %v1032_v15 }
 0x433   : > { %v1722_v17 = vpop.eup %1721  ;;  %1587 = vmatpush3.msra.mxu1 %v1199_v16  ;;  %1588 = vmatprep.mubr.msk.f32.mxu1 %vm1986_vm0, %v1987_v1 }
 0x434   : > { %v1197_v18 = vmul.f32 %v1722_v17, %v1714_v2 }
 0x436   : > { %1589 = vmatmul.mubr.msk.f32.vlgmr.msra.gmra.mrb[10].mxu1 %vm617_vm2, %v1197_v18 }
 0x498   : > { %v774_v19 = vpop.f32.mrb[4].mxu1 }
 0x499   : > { %v1560_v20 = vpop.f32.mrb[5].mxu1 }
 0x501   : > { %v940_v21 = vpop.f32.mrb[6].mxu1 }
 0x502   : > { %1275 = vrot.lane.b32.xlu1 %v940_v21, %s1991_s26  ;;  %v1570_v22 = vpop.f32.mrb[7].mxu1 }
 0x505   : > { %v1105_v23 = vpop.f32.mrb[8].mxu1 }
 0x506   : > { %1279 = vrot.lane.b32.xlu0 %v1105_v23, %s1992_s24  ;;  %v1580_v24 = vpop.f32.mrb[9].mxu1 }
 0x509   : > { %v1270_v25 = vpop.f32.mrb[10].mxu1 }
 0x50a   : > { %1283 = vrot.lane.b32.xlu1 %v1270_v25, %s1993_s12  ;;  %v1590_v1 = vpop.f32.mrb[11].mxu1 }
 0x574   : > { %v1276_v26 = vpop.permute.xlu1 %1275 }
 0x575   : > { %v1286_v28 = vsel %vm617_vm2, %v774_v19, %v1276_v26 }
 0x578   : > { %v1280_v27 = vpop.permute.xlu0 %1279 }
 0x579   : > { %v1288_v29 = vsel %vm1287_vm3, %v1286_v28, %v1280_v27 }
 0x57c   : > { %v1284_v30 = vpop.permute.xlu1 %1283 }
 0x57d   : > { %v1290_v31 = vsel %vm1289_vm4, %v1288_v29, %v1284_v30 }
 0x57e   : > { %1291 = vst.msk [vmem:[%s381_s14] sm:$0xff] %vm387_vm1, %v1290_v31 }
 0x57f   : > { %1910 = shalt.err (!%p1907_p5)
}
 0x580   : > { %s1911_s3 = scalar_lea.hbm %s2390_s13, 128  ;;  %s1915_s16 = scalar_lea.hbm %s2441_s6, 256 }
 0x581   : > { %p1912_p2 = scmp.ne.s32.totalorder %s2390_s13, %s1911_s3  ;;  %p1916_p12 = scmp.lt.u32.totalorder %s2390_s13, %s2441_s6 }
 0x582   : > { %p1917_p1 = scmp.lt.u32.totalorder %s1915_s16, %s1911_s3  ;;  %p1919_p10 = scmp.lt.u32.totalorder %s1911_s3, %s2390_s13 }
 0x583   : > { %p1913_p8 = pnand %p1912_p2, %p2496_p0 }
 0x584   : > { %p1918_p6 = por %p1917_p1, %p1916_p12 }
 0x585   : > { %p1914_p11 = pneg %p1913_p8 }
 0x586   : > { %p1920_p4 = por %p1919_p10, %p1918_p6 }
 0x588   : > { %p1921_p9 = pnand %p1920_p4, %p1914_p11 }
 0x58a   : > { %1924 = shalt.err (!%p1921_p9)
}
 0x58b   : > { %1627 = dma.vmem_to_hbm [thread:$0]  (%p2496_p0), %s2392_s28, 128, %s2390_s13, %s1293_s25  }
 0x58c PF: > { %s2497_s27 = sld [smem:[#allocation19_spill]]  ;;  %s2498_s20 = sld [smem:[#allocation21_spill]] }
 0x58d   : > { %s2499_s10 = sld [smem:[#allocation20_spill]] }
 0x592   : > { %s1318_s26 = sand.u32 1, %s2497_s27   ;;  %p2500_p13 = scmp.ne.s32.totalorder %s2498_s20, 0 }
 0x593   : > { %p2501_p7 = scmp.ge.s32.totalorder %s2499_s10, 2  ;;  %s1319_s24 = scalar_lea.sflag [#allocation4], %s1318_s26 }
 0x595   : > { %p1650_p3 = pnand %p2501_p7, %p2500_p13 }
 0x597   : > { %1958 = dma.done.wait (!%p1650_p3), %s1319_s24, 128  }
 0x598   : > { %1960 = vsyncadd (!%p1650_p3), %s1319_s24, 4294967168  ;;  %s2502_s24 = sld [smem:[#allocation22_spill]]  ;;  %s2503_s12 = sld [smem:[#allocation23_spill]] }
 0x599   : > { %s2504_s21 = smov %s1967_s22  ;;  %s2505_s22 = smov %s1971_s23 }
 0x59e   : > { %p24_p5 = scmp.ge.s32.totalorder %s2502_s24, 4   ;;  %s2506_s23 = smov %s2503_s12 }
 0x5a0   :  { %26 = sbr.rel (!%p24_p5) target bundleno = 12 (0xc), region = 125 }
 0x5a7   :  { %1324 = vsyncpa [#allocation3], 1 }
 0x5a8   :  { %1326 = vsyncpa [#allocation3 + $0x1], 1 }
 0x5a9   :  { %1327 = vsyncpa [#allocation6], 1 }
 0x5aa   :  { %1329 = vsyncpa [#allocation6 + $0x1], 1 }
 0x5ab   :  { %1330 = vsyncpa [#allocation9], 1 }
 0x5ac   :  { %1331 = vsyncpa [#allocation12], 1 }
 0x5ad   :  { %1332 = vsyncpa [#allocation4], 1 }
 0x5ae   :  { %1334 = vsyncpa [#allocation4 + $0x1], 1 }

</bundles_post_ra>
